<compile_context>
chip_gen: v7x
topology: tpu7x:2x2x1
jax: 0.10.0
libtpu: 0.0.40
codegen_flags: <defaults>
</compile_context>

<pallas_src>
import jax
import jax.numpy as jnp
from jax.experimental import pallas as pl
from jax.experimental.pallas import tpu as pltpu

_LANE = 128
_TILE_BYTES_CAP = 2 * 1024 * 1024        # per-tile cap; 2x in + 2x out bufs <= 8 MiB VMEM
_VMEM_LIMIT = 32 * 1024 * 1024           # safe scoped VMEM limit on v5e / v6e / v7x
_COL_CANDIDATES = (8192, 4096, 2048, 1024, 512, 256, 128)   # prefer lane-dense slabs


def _identity_kernel(x_ref, o_ref):
    # Elementwise pass-through of the current VMEM tile.
    o_ref[...] = x_ref[...]


def _min_sublane(itemsize):
    # dtype-aware native packed sublane tile: 8 (4-byte), 16 (2-byte), 32 (1-byte).
    return max(8, 32 // itemsize)


def _pick_tile_rows(rows, cols, itemsize, sub):
    """Largest multiple of `sub` that divides `rows` with tile bytes <= cap."""
    cap_rows = max(sub, (_TILE_BYTES_CAP // (cols * itemsize)) // sub * sub)
    t = min(rows, cap_rows)
    t = max(sub, (t // sub) * sub)
    while t > sub and rows % t != 0:
        t -= sub
    return t


def _copy_slab(slab, tile_r, cols):
    rows = slab.shape[0]
    grid = (rows // tile_r,)
    return pl.pallas_call(
        _identity_kernel,
        out_shape=jax.ShapeDtypeStruct((rows, cols), slab.dtype),
        grid_spec=pltpu.PrefetchScalarGridSpec(
            num_scalar_prefetch=0,
            grid=grid,
            in_specs=[pl.BlockSpec((tile_r, cols), lambda i: (i, 0))],
            out_specs=pl.BlockSpec((tile_r, cols), lambda i: (i, 0)),
        ),
        compiler_params=pltpu.CompilerParams(
            dimension_semantics=("parallel",),   # lets v7x shard steps across its 2 TCs
            vmem_limit_bytes=_VMEM_LIMIT,
        ),
        input_output_aliases={0: 0},             # in-place identity, no second HBM buffer
    )(slab)


def basic_bart_forward(x):
    """Identity forward pass of BasicBart, executed as a Pallas TPU kernel."""
    orig_shape = x.shape
    dtype = x.dtype
    itemsize = jnp.dtype(dtype).itemsize
    sub = _min_sublane(itemsize)

    n = 1
    for d in orig_shape:
        n *= d
    if n == 0:
        return x

    # Fast path: reshape directly into a lane-dense (rows, cols) slab with NO
    # padding / scatter / slice when the element count factors cleanly.
    for cols in _COL_CANDIDATES:
        if n % cols == 0 and (n // cols) % sub == 0:
            rows = n // cols
            tile_r = _pick_tile_rows(rows, cols, itemsize, sub)
            slab = x.reshape(rows, cols)
            out = _copy_slab(slab, tile_r, cols)
            return out.reshape(orig_shape)

    # Padded path: one jnp.pad (no zero-fill + scatter), lane-dense columns,
    # single slice at the end.
    cols = 1024 if n >= 8 * 1024 else _LANE
    rows = -(-n // cols)
    rows_min = -(-rows // sub) * sub
    cap_rows = max(sub, (_TILE_BYTES_CAP // (cols * itemsize)) // sub * sub)
    tile_r = min(rows_min, cap_rows)
    rows_pad = -(-rows_min // tile_r) * tile_r
    padded_len = rows_pad * cols

    flat = x.reshape(-1)
    slab = jnp.pad(flat, (0, padded_len - n)).reshape(rows_pad, cols)
    out = _copy_slab(slab, tile_r, cols)
    return out.reshape(-1)[:n].reshape(orig_shape)


class BasicBartPallas:
    """JAX/Pallas analogue of bert_seq2seq.basic_bert.BasicBart.

    The base class has no parameters; the checkpoint-I/O / device helpers of
    the PyTorch class have no kernel equivalent and are omitted.
    """

    def __init__(self):
        # Donate x so the aliased pallas output can reuse the input HBM buffer.
        self._forward = jax.jit(basic_bart_forward, donate_argnums=(0,))

    def forward(self, x):
        return self._forward(x)

    def __call__(self, x):
        return self.forward(x)


if __name__ == "__main__":
    key = jax.random.PRNGKey(0)
    x = jax.random.normal(key, (2, 4, 16, 16), dtype=jnp.float32)
    x_host = jax.device_get(x)  # keep a host copy; x itself is donated to the kernel

    model = BasicBartPallas()
    y = jax.block_until_ready(model(x))

    assert y.shape == tuple(x_host.shape) and y.dtype == x_host.dtype
    assert bool(jnp.allclose(y, jnp.asarray(x_host))), "identity forward mismatch"
    print("KERNEL_OK")
</pallas_src>

<mosaic_0001>
module attributes {stable_mosaic.version = 11 : i64} {
  func.func @_identity_kernel(%arg0: i32, %arg1: memref<8x256xf32, #tpu.memory_space<vmem>>, %arg2: memref<8x256xf32, #tpu.memory_space<vmem>>) attributes {dimension_semantics = [#tpu.dimension_semantics<parallel>], iteration_bounds = array<i64: 1>, scalar_prefetch = 0 : i64, scratch_operands = 0 : i64, tpu.core_type = #tpu.core_type<tc>, window_params = [{transform_indices = @transform_0, window_bounds = array<i64: 8, 256>}, {transform_indices = @transform_1, window_bounds = array<i64: 8, 256>}]} {
    %c0 = arith.constant 0 : index
    %c0_0 = arith.constant 0 : index
    %0 = vector.load %arg1[%c0, %c0_0] : memref<8x256xf32, #tpu.memory_space<vmem>>, vector<8x256xf32>
    %c0_1 = arith.constant 0 : index
    %c0_2 = arith.constant 0 : index
    %1 = vector.load %arg2[%c0_1, %c0_2] : memref<8x256xf32, #tpu.memory_space<vmem>>, vector<8x256xf32>
    tpu.vector_store %arg2[%c0_1, %c0_2], %0 {strides = array<i32>} : memref<8x256xf32, #tpu.memory_space<vmem>>, vector<8x256xf32>,
    return
  }
  func.func @transform_0(%arg0: i32) -> (i32, i32) {
    %c0_i32 = arith.constant 0 : i32
    %c0_i32_0 = arith.constant 0 : i32
    return %arg0, %c0_i32 : i32, i32
  }
  func.func @transform_1(%arg0: i32) -> (i32, i32) {
    %c0_i32 = arith.constant 0 : i32
    %c0_i32_0 = arith.constant 0 : i32
    return %arg0, %c0_i32 : i32, i32
  }
}

</mosaic_0001>

<bundles_post_ra>
// kernel: basic_bart_forward.1
= control target key start
LH: loop header
LB: loop body
LE: loop exit
PB: predicated region body
PF: predicated region fallthrough
CT: control target
= control target key end

     0   :  { %s38_s0 = inlined_call_operand.vmem [shape: f32[8,256], index: 0, kind: input, shape index: {}, may-alias: {0,1}]   ;;  %s39_s1 = inlined_call_operand.vmem [shape: f32[8,256], index: 1, kind: output, shape index: {}, may-alias: {0,1}]  }
   0x1   :  { %v8_v0 = vld [vmem:[%s38_s0] sm:$0xff]  ;;  %v9_v1 = vld [vmem:[%s38_s0 + $0x8] sm:$0xff] }
   0x2   :  { %10 = vst [vmem:[%s39_s1] sm:$0xff] %v8_v0  ;;  %11 = vst [vmem:[%s39_s1 + $0x8] sm:$0xff] %v9_v1 }

</bundles_post_ra>
